<compile_context>
chip_gen: v7x
topology: tpu7x:2x2x1
jax: 0.10.0
libtpu: 0.0.40
codegen_flags: <defaults>
</compile_context>

<pallas_src>
import math
import functools

import numpy as np
import jax
import jax.numpy as jnp
from jax.experimental import pallas as pl
from jax.experimental.pallas import tpu as pltpu

# Edge feature map (PyG molecule convention): bond_type(5), stereo(6), is_conjugated(2)
e_map = {
    "bond_type": ["misc", "SINGLE", "DOUBLE", "TRIPLE", "AROMATIC"],
    "stereo": ["STEREONONE", "STEREOZ", "STEREOE", "STEREOCIS", "STEREOTRANS", "STEREOANY"],
    "is_conjugated": [False, True],
}
EDGE_FEAT_DIMS = [len(v) for v in e_map.values()]          # [5, 6, 2]
NUM_FEATS = len(EDGE_FEAT_DIMS)                            # 3
VOCAB = sum(EDGE_FEAT_DIMS)                                # 13
OFFSETS = [0]
for d in EDGE_FEAT_DIMS[:-1]:
    OFFSETS.append(OFFSETS[-1] + d)                        # [0, 5, 11]

GROUP = 8                                                  # edges packed per output row
NPACK = GROUP * NUM_FEATS                                  # 24 packed feature columns
VBIG = GROUP * VOCAB                                       # 104 rows of block-diag table
MAX_TILE_E = 8192                                          # per-grid-step edge budget
TILE_UNIT = GROUP * 8                                      # 64: keeps sublane alignment


def bond_encoder_kernel(attr_ref, sel_ref, w_ref, out_ref):
    # attr_ref: (TP, NPACK+1) int32  — 8 edges per row (group-major, feature-minor),
    #                                  last column is a constant 1 (offset carrier).
    # sel_ref:  (NPACK+1, VBIG) f32  — 0/1 column-selection matrix; last row holds the
    #                                  flat vocab offset of every expanded column.
    # w_ref:    (VBIG, GROUP*D) f32  — block-diagonal concat of the embedding table.
    # out_ref:  (TP, GROUP*D) f32    — 8 edge embeddings (D each) per row, lane-dense.
    attr_f = attr_ref[...].astype(jnp.float32)                       # small (TP, 25) cast
    # expanded[t, v] = attr value of feature f(v) for packed edge g(v) + flat offset(g, f)
    expanded = jnp.dot(attr_f, sel_ref[...], preferred_element_type=jnp.float32)
    tp = expanded.shape[0]
    viota = jax.lax.broadcasted_iota(jnp.int32, (tp, VBIG), 1).astype(jnp.float32)
    multi_hot = (expanded == viota).astype(jnp.float32)              # single cmp + cast
    # sum_f emb_f(attr) for 8 edges at once == multi_hot @ blockdiag(W, ..., W)
    out_ref[...] = jnp.dot(multi_hot, w_ref[...],
                           preferred_element_type=jnp.float32)


def _choose_tile_e(E):
    """Large tiles (amortize ~0.35us/step) but >=2 grid steps when E allows (megacore)."""
    if E <= TILE_UNIT:
        return TILE_UNIT
    half = -(-E // 2)
    half = -(-half // TILE_UNIT) * TILE_UNIT
    return min(MAX_TILE_E, max(TILE_UNIT, half))


@functools.partial(jax.jit, static_argnames=("tile_e",))
def bond_encoder(edge_attr, sel, w_big, *, tile_e=None):
    """edge_attr: (E, 3) int32, sel: (25, 104) f32, w_big: (104, 8*D) f32 -> (E, D) f32."""
    E, F = edge_attr.shape
    assert F == NUM_FEATS
    VB, DB = w_big.shape
    assert VB == VBIG and DB % GROUP == 0
    D = DB // GROUP

    if tile_e is None:
        tile_e = _choose_tile_e(E)
    assert tile_e % TILE_UNIT == 0, "tile_e/GROUP must be a multiple of 8 sublanes"

    # Pad ragged E up to a multiple of tile_e (padded rows are computed then dropped).
    E_pad = pl.cdiv(E, tile_e) * tile_e
    if E_pad != E:
        edge_attr = jnp.pad(edge_attr, ((0, E_pad - E), (0, 0)))

    rows = E_pad // GROUP                          # packed rows
    tile_rows = tile_e // GROUP                    # packed rows per grid step
    attr_packed = edge_attr.reshape(rows, NPACK)   # row-major, contiguous reshape
    # Append a constant-1 column so the selection matmul can add the flat offsets.
    attr_aug = jnp.concatenate(
        [attr_packed, jnp.ones((rows, 1), edge_attr.dtype)], axis=1)  # (rows, 25)
    grid = (rows // tile_rows,)

    out_packed = pl.pallas_call(
        bond_encoder_kernel,
        out_shape=jax.ShapeDtypeStruct((rows, DB), jnp.float32),
        grid=grid,
        in_specs=[
            pl.BlockSpec((tile_rows, NPACK + 1), lambda i: (i, 0)),   # packed edge attrs
            pl.BlockSpec((NPACK + 1, VBIG), lambda i: (0, 0)),        # selection matrix
            pl.BlockSpec((VB, DB), lambda i: (0, 0)),                 # block-diag table
        ],
        out_specs=pl.BlockSpec((tile_rows, DB), lambda i: (i, 0)),
        compiler_params=pltpu.CompilerParams(
            dimension_semantics=("parallel",)),                       # megacore on v7x
    )(attr_aug, sel, w_big)

    return out_packed.reshape(E_pad, D)[:E]


def init_params(emb_dim, key):
    """Xavier-uniform init per feature table (matches torch.nn.init.xavier_uniform_)."""
    tables = []
    for i, dim in enumerate(EDGE_FEAT_DIMS):
        k = jax.random.fold_in(key, i)
        bound = math.sqrt(6.0 / (dim + emb_dim))
        tables.append(jax.random.uniform(k, (dim, emb_dim), jnp.float32,
                                         minval=-bound, maxval=bound))
    w_concat = jnp.concatenate(tables, axis=0)                        # (13, emb_dim)
    return tables, w_concat


def build_block_diag(w_concat):
    """blockdiag(W x GROUP): (GROUP*13, GROUP*emb_dim)."""
    w = np.asarray(w_concat)
    V, D = w.shape
    big = np.zeros((GROUP * V, GROUP * D), w.dtype)
    for g in range(GROUP):
        big[g * V:(g + 1) * V, g * D:(g + 1) * D] = w
    return jnp.asarray(big)


def build_selection_matrix():
    """(NPACK+1, VBIG) f32: 0/1 column selection; last row carries flat vocab offsets."""
    s = np.zeros((NPACK + 1, VBIG), np.float32)
    for g in range(GROUP):
        for f in range(NUM_FEATS):
            col = g * NUM_FEATS + f
            base = g * VOCAB + OFFSETS[f]
            for local in range(EDGE_FEAT_DIMS[f]):
                v = base + local
                s[col, v] = 1.0
                s[NPACK, v] = float(base)
    return jnp.asarray(s)


if __name__ == "__main__":
    key = jax.random.PRNGKey(0)
    emb_dim = 32
    num_edges = 1000   # ragged; auto tile -> 512 edges/step, 2 grid steps

    tables, w_concat = init_params(emb_dim, key)
    w_big = build_block_diag(w_concat)          # (104, 256) -> lane-dense output
    sel = build_selection_matrix()              # (25, 104)

    # deterministic edge attributes: each column within its own vocab range
    cols = []
    for i, dim in enumerate(EDGE_FEAT_DIMS):
        cols.append(jax.random.randint(jax.random.fold_in(key, 100 + i),
                                       (num_edges, 1), 0, dim, jnp.int32))
    edge_attr = jnp.concatenate(cols, axis=1)   # (E, 3) int32

    out = bond_encoder(edge_attr, sel, w_big)
    out = jax.block_until_ready(out)

    # reference: plain JAX embedding-sum (same semantics as the PyTorch module)
    ref = jnp.zeros((num_edges, emb_dim), jnp.float32)
    for i in range(NUM_FEATS):
        ref = ref + tables[i][edge_attr[:, i]]

    assert out.shape == (num_edges, emb_dim)
    assert jnp.allclose(out, ref, atol=1e-5, rtol=1e-5), "mismatch vs reference"

    print("KERNEL_OK")
</pallas_src>

<mosaic_0001>
module attributes {stable_mosaic.version = 11 : i64} {
  func.func @bond_encoder_kernel(%arg0: i32, %arg1: memref<64x25xi32, #tpu.memory_space<vmem>>, %arg2: memref<25x104xf32, #tpu.memory_space<vmem>>, %arg3: memref<104x256xf32, #tpu.memory_space<vmem>>, %arg4: memref<64x256xf32, #tpu.memory_space<vmem>>) attributes {dimension_semantics = [#tpu.dimension_semantics<parallel>], iteration_bounds = array<i64: 2>, scalar_prefetch = 0 : i64, scratch_operands = 0 : i64, tpu.core_type = #tpu.core_type<tc>, window_params = [{transform_indices = @transform_0, window_bounds = array<i64: 64, 25>}, {pipeline_mode = #tpu.pipeline_mode<synchronous>, transform_indices = @transform_1, window_bounds = array<i64: 25, 104>}, {pipeline_mode = #tpu.pipeline_mode<synchronous>, transform_indices = @transform_2, window_bounds = array<i64: 104, 256>}, {transform_indices = @transform_3, window_bounds = array<i64: 64, 256>}]} {
    %c0 = arith.constant 0 : index
    %c0_0 = arith.constant 0 : index
    %0 = vector.load %arg1[%c0, %c0_0] : memref<64x25xi32, #tpu.memory_space<vmem>>, vector<64x25xi32>
    %1 = arith.sitofp %0 : vector<64x25xi32> to vector<64x25xf32>
    %c0_1 = arith.constant 0 : index
    %c0_2 = arith.constant 0 : index
    %2 = vector.load %arg2[%c0_1, %c0_2] : memref<25x104xf32, #tpu.memory_space<vmem>>, vector<25x104xf32>
    %cst = arith.constant dense<0.000000e+00> : vector<64x104xf32>
    %3 = tpu.matmul %1, %2, %cst {dimension_numbers = #tpu.dot_dimension_numbers<[1], [0], [0], [1], [0, 0, 1, 1], [], []>} : vector<64x25xf32>, vector<25x104xf32>, vector<64x104xf32> -> vector<64x104xf32>
    %4 = tpu.iota {dimensions = array<i32: 1>} : vector<64x104xi32>
    %5 = arith.sitofp %4 : vector<64x104xi32> to vector<64x104xf32>
    %6 = arith.cmpf oeq, %3, %5 : vector<64x104xf32>
    %7 = arith.extui %6 : vector<64x104xi1> to vector<64x104xi32>
    %8 = arith.sitofp %7 : vector<64x104xi32> to vector<64x104xf32>
    %c0_3 = arith.constant 0 : index
    %c0_4 = arith.constant 0 : index
    %9 = vector.load %arg3[%c0_3, %c0_4] : memref<104x256xf32, #tpu.memory_space<vmem>>, vector<104x256xf32>
    %cst_5 = arith.constant dense<0.000000e+00> : vector<64x256xf32>
    %10 = tpu.matmul %8, %9, %cst_5 {dimension_numbers = #tpu.dot_dimension_numbers<[1], [0], [0], [1], [0, 0, 1, 1], [], []>} : vector<64x104xf32>, vector<104x256xf32>, vector<64x256xf32> -> vector<64x256xf32>
    %c0_6 = arith.constant 0 : index
    %c0_7 = arith.constant 0 : index
    %11 = vector.load %arg4[%c0_6, %c0_7] : memref<64x256xf32, #tpu.memory_space<vmem>>, vector<64x256xf32>
    tpu.vector_store %arg4[%c0_6, %c0_7], %10 {strides = array<i32>} : memref<64x256xf32, #tpu.memory_space<vmem>>, vector<64x256xf32>,
    return
  }
  func.func @transform_0(%arg0: i32) -> (i32, i32) {
    %c0_i32 = arith.constant 0 : i32
    %c0_i32_0 = arith.constant 0 : i32
    return %arg0, %c0_i32 : i32, i32
  }
  func.func @transform_1(%arg0: i32) -> (i32, i32) {
    %c0_i32 = arith.constant 0 : i32
    %c0_i32_0 = arith.constant 0 : i32
    %c0_i32_1 = arith.constant 0 : i32
    return %c0_i32, %c0_i32_0 : i32, i32
  }
  func.func @transform_2(%arg0: i32) -> (i32, i32) {
    %c0_i32 = arith.constant 0 : i32
    %c0_i32_0 = arith.constant 0 : i32
    %c0_i32_1 = arith.constant 0 : i32
    return %c0_i32, %c0_i32_0 : i32, i32
  }
  func.func @transform_3(%arg0: i32) -> (i32, i32) {
    %c0_i32 = arith.constant 0 : i32
    %c0_i32_0 = arith.constant 0 : i32
    return %arg0, %c0_i32 : i32, i32
  }
}

</mosaic_0001>

<bundles_post_ra>
// kernel: bond_encoder.1
= control target key start
LH: loop header
LB: loop body
LE: loop exit
PB: predicated region body
PF: predicated region fallthrough
CT: control target
= control target key end

     0   :  { %s753_s12 = smov 0   ;;  %s916_s0 = inlined_call_operand.vmem [shape: s32[128,25], index: 0, kind: input, shape index: {}]   ;;  %s917_s1 = inlined_call_operand.vmem [shape: f32[25,104], index: 1, kind: input, shape index: {}]   ;;  %s918_s2 = inlined_call_operand.vmem [shape: f32[104,256], index: 2, kind: input, shape index: {}]   ;;  %s919_s3 = inlined_call_operand.vmem [shape: f32[128,256], index: 3, kind: output, shape index: {}]  }
   0x1 LB: > { %s595_s13 = sadd.s32 4294967295, %s729_s12   ;;  %p599_p0 = scmp.ge.s32.totalorder %s729_s12, 1  ;;  %s729_s12 = sphi %s753_s12, %s13_s12  }
   0x2   : > { %p138_p1 = scmp.lt.s32.totalorder %s729_s12, 3 }
   0x4   : > { %p139_p2 = pnand %p599_p0, %p138_p1 }
   0x5   : > { %v192_v0 = vld [vmem:[%s917_s1] sm:$0xff] (!%p139_p2)  ;;  %v193_v1 = vld [vmem:[%s917_s1 + $0x8] sm:$0xff] (!%p139_p2)  ;;  %v194_v2 = vld [vmem:[%s917_s1 + $0x10] sm:$0xff] (!%p139_p2)  ;;  %vm221_vm0 = vcmask (!%p139_p2), 1040384   ;;  %s600_s20 = sshll.u32 (!%p139_p2), %s595_s13, 3  ;;  %vm731_vm1 = vmmov (!%p139_p2), 1   ;;  %v330_v62 = vlaneseq (!%p139_p2) }
   0x6   : > { %142 = sbr.rel (%p139_p2) target bundleno = 469 (0x1d5), region = 32  ;;  %v665_v3 = vpack.c.bf16 (!%p139_p2), %v193_v1, %v192_v0  ;;  %v195_v4 = vld [vmem:[%s917_s1 + $0x18] sm:$0x1] (!%p139_p2)  ;;  %vm773_vm2 = vmpackc.low (!%p139_p2), %vm221_vm0, %vm731_vm1  ;;  %p164_p3 = scmp.lt.s32.totalorder (!%p139_p2), %s600_s20, 15  ;;  %v358_v6 = vld [vmem:[%s918_s2 + $0x8] sm:$0xff] (!%p139_p2)  ;;  %vm196_vm3 = vcmask (!%p139_p2), 203776  }
   0x7   : > { %v669_v7 = vpack.c.bf16 (!%p139_p2), %v195_v4, %v194_v2  ;;  %v360_v8 = vld [vmem:[%s918_s2 + $0x18] sm:$0xff] (!%p139_p2)  ;;  %v357_v9 = vld [vmem:[%s918_s2] sm:$0xff] (!%p139_p2)  ;;  %v359_v10 = vld [vmem:[%s918_s2 + $0x10] sm:$0xff] (!%p139_p2)  ;;  %v732_v61 = vmov (!%p139_p2), 0.0   ;;  %v331_v63 = vand.u32 (!%p139_p2), 127, %v330_v62  ;;  %vm383_vm4 = vcmask (!%p139_p2), 850944  }
   0x8   : > { %666 = vmatprep.subr.bf16.mxu0 (!%p139_p2), %v665_v3  ;;  %v675_v11 = vpack.c.bf16 (!%p139_p2), %v360_v8, %v358_v6  ;;  %v362_v12 = vld [vmem:[%s918_s2 + $0x28] sm:$0xff] (!%p139_p2)  ;;  %v364_v13 = vld [vmem:[%s918_s2 + $0x38] sm:$0xff] (!%p139_p2)  ;;  %v677_v14 = vpack.c.bf16 (!%p139_p2), %v359_v10, %v357_v9  ;;  %v361_v16 = vld [vmem:[%s918_s2 + $0x20] sm:$0xff] (!%p139_p2)  ;;  %490 = vmatprep.mubr.f32.mxu1 (!%p139_p2), %v732_v61 }
   0x9   : > { %668 = vmatpush3.bf16.msra.mxu0 (!%p139_p2), %v665_v3  ;;  %v679_v15 = vpack.c.bf16 (!%p139_p2), %v364_v13, %v362_v12  ;;  %v363_v17 = vld [vmem:[%s918_s2 + $0x30] sm:$0xff] (!%p139_p2)  ;;  %v366_v18 = vld [vmem:[%s918_s2 + $0x48] sm:$0xff] (!%p139_p2)  ;;  %v368_v19 = vld [vmem:[%s918_s2 + $0x58] sm:$0xff] (!%p139_p2)  ;;  %v332_v0 = vcvt.s32.f32 (!%p139_p2), %v331_v63 }
   0xa   : > { %671 = vmatprep.subr.msk.bf16.mxu0 (!%p139_p2), %vm773_vm2, %v669_v7  ;;  %699 = vmatprep.subr.bf16.mxu1 (!%p139_p2), %v675_v11  ;;  %v681_v27 = vpack.c.bf16 (!%p139_p2), %v363_v17, %v361_v16  ;;  %v683_v29 = vpack.c.bf16 (!%p139_p2), %v368_v19, %v366_v18  ;;  %v365_v30 = vld [vmem:[%s918_s2 + $0x40] sm:$0xff] (!%p139_p2)  ;;  %v367_v31 = vld [vmem:[%s918_s2 + $0x50] sm:$0xff] (!%p139_p2)  ;;  %v370_v32 = vld [vmem:[%s918_s2 + $0x68] sm:$0xff] (!%p139_p2) }
   0xb   : > { %706 = vmatpush1.bf16.msra.mxu1 (!%p139_p2), %v677_v14  ;;  %v372_v33 = vld [vmem:[%s918_s2 + $0x78] sm:$0xff] (!%p139_p2)  ;;  %v685_v37 = vpack.c.bf16 (!%p139_p2), %v367_v31, %v365_v30  ;;  %v369_v40 = vld [vmem:[%s918_s2 + $0x60] sm:$0xff] (!%p139_p2)  ;;  %v371_v41 = vld [vmem:[%s918_s2 + $0x70] sm:$0xff] (!%p139_p2) }
   0xc   : > { %700 = vmatprep.subr.bf16.mxu1 (!%p139_p2), %v679_v15  ;;  %v687_v39 = vpack.c.bf16 (!%p139_p2), %v372_v33, %v370_v32  ;;  %v374_v42 = vld [vmem:[%s918_s2 + $0x88] sm:$0xff] (!%p139_p2)  ;;  %v376_v43 = vld [vmem:[%s918_s2 + $0x98] sm:$0xff] (!%p139_p2)  ;;  %v689_v47 = vpack.c.bf16 (!%p139_p2), %v371_v41, %v369_v40  ;;  %v373_v49 = vld [vmem:[%s918_s2 + $0x80] sm:$0xff] (!%p139_p2) }
   0xd   : > { %s923_s20 = smov (!%p164_p3, %s600_s20), 15  ;;  %674 = vmatpush3.bf16.msk.msra.mxu0 %vm773_vm2, %v669_v7  ;;  %v691_v48 = vpack.c.bf16 %v376_v43, %v374_v42  ;;  %v375_v50 = vld [vmem:[%s918_s2 + $0x90] sm:$0xff]  ;;  %v378_v51 = vld [vmem:[%s918_s2 + $0xa8] sm:$0xff]  ;;  %v380_v52 = vld [vmem:[%s918_s2 + $0xb8] sm:$0xff] }
   0xe   : > { %s601_s8 = sshll.u32 %s923_s20, 3  ;;  %676 = vmatprep.subr.bf16.mxu0 %v675_v11  ;;  %v693_v54 = vpack.c.bf16 %v375_v50, %v373_v49  ;;  %v695_v55 = vpack.c.bf16 %v380_v52, %v378_v51  ;;  %v377_v56 = vld [vmem:[%s918_s2 + $0xa0] sm:$0xff]  ;;  %v379_v57 = vld [vmem:[%s918_s2 + $0xb0] sm:$0xff]  ;;  %v382_v59 = vld [vmem:[%s918_s2 + $0xc8] sm:$0xff]  ;;  %s632_s29 = sshll.u32 %s923_s20, 4 }
   0xf   : > { %s809_s16 = scalar_lea.vmem %s916_s0, %s601_s8  ;;  %707 = vmatpush1.bf16.msra.mxu1 %v681_v27  ;;  %v697_v58 = vpack.c.bf16 %v379_v57, %v377_v56  ;;  %v381_v60 = vld [vmem:[%s918_s2 + $0xc0] sm:$0xff]  ;;  %s895_s5 = scalar_lea.vmem %s919_s3, %s632_s29 }
  0x10   : > { %v176_v20 = vld [vmem:[%s809_s16] sm:$0xff]  ;;  %v177_v21 = vld [vmem:[%s809_s16 + $0x8] sm:$0xff]  ;;  %v178_v22 = vld [vmem:[%s809_s16 + $0x10] sm:$0xff]  ;;  %701 = vmatprep.subr.bf16.mxu1 %v683_v29 }
  0x11   : > { %v184_v23 = vcvt.s32.f32 %v176_v20  ;;  %v185_v24 = vcvt.s32.f32 %v177_v21  ;;  %v186_v25 = vcvt.s32.f32 %v178_v22  ;;  %v179_v26 = vld [vmem:[%s809_s16 + $0x18] sm:$0xff]  ;;  %v180_v28 = vld [vmem:[%s809_s16 + $0x20] sm:$0xff]  ;;  %v181_v36 = vld [vmem:[%s809_s16 + $0x28] sm:$0xff] }
  0x12   : > { %v187_v34 = vcvt.s32.f32 %v179_v26  ;;  %v188_v35 = vcvt.s32.f32 %v180_v28  ;;  %v182_v38 = vld [vmem:[%s809_s16 + $0x30] sm:$0xff]  ;;  %v189_v44 = vcvt.s32.f32 %v181_v36  ;;  %v183_v46 = vld [vmem:[%s809_s16 + $0x38] sm:$0xff] }
  0x13   : > { %653 = vmatprep.mubr.msk.f32.mxu0 %vm196_vm3, %v184_v23  ;;  %708 = vmatpush1.bf16.msra.mxu1 %v685_v37  ;;  %v190_v45 = vcvt.s32.f32 %v182_v38  ;;  %v191_v53 = vcvt.s32.f32 %v183_v46 }
  0x14   : > { %654 = vmatmul.mubr.msk.f32.vlgmr.msra.gmra.mrb[0].mxu0 %vm196_vm3, %v185_v24  ;;  %702 = vmatprep.subr.bf16.mxu1 %v687_v39 }
  0x15   : > { %656 = vmatprep.mubr.msk.f32.mxu0 %vm196_vm3, %v186_v25  ;;  %678 = vmatpush1.bf16.msra.mxu0 %v677_v14 }
  0x16   : > { %680 = vmatprep.subr.bf16.mxu0 %v679_v15 }
  0x17   : > { %709 = vmatpush1.bf16.msra.mxu1 %v689_v47 }
  0x18   : > { %657 = vmatmul.mubr.msk.f32.gmra.mrb[2].mxu0 %vm196_vm3, %v187_v34  ;;  %703 = vmatprep.subr.bf16.mxu1 %v691_v48 }
  0x19   : > { %659 = vmatprep.mubr.msk.f32.mxu0 %vm196_vm3, %v188_v35  ;;  %682 = vmatpush1.bf16.msra.mxu0 %v681_v27 }
  0x1a   : > { %684 = vmatprep.subr.bf16.mxu0 %v683_v29 }
  0x1b   : > { %710 = vmatpush1.bf16.msra.mxu1 %v693_v54 }
  0x1c   : > { %660 = vmatmul.mubr.msk.f32.gmra.mrb[4].mxu0 %vm196_vm3, %v189_v44  ;;  %704 = vmatprep.subr.bf16.mxu1 %v695_v55 }
  0x1d   : > { %662 = vmatprep.mubr.msk.f32.mxu0 %vm196_vm3, %v190_v45  ;;  %686 = vmatpush1.bf16.msra.mxu0 %v685_v37 }
  0x1e   : > { %688 = vmatprep.subr.bf16.mxu0 %v687_v39 }
  0x1f   : > { %711 = vmatpush1.bf16.msra.mxu1 %v697_v58 }
  0x20   : > { %663 = vmatmul.mubr.msk.f32.gmra.mrb[6].mxu0 %vm196_vm3, %v191_v53  ;;  %705 = vmatprep.subr.mxu1 %v382_v59 }
  0x21   : > { %690 = vmatpush1.bf16.msra.mxu0 %v689_v47  ;;  %472 = vmatprep.mubr.f32.mxu0 %v732_v61 }
  0x22   : > { %692 = vmatprep.subr.bf16.mxu0 %v691_v48 }
  0x23   : > { %712 = vmatpush1.msra.mxu1 %v381_v60 }
  0x25   : > { %694 = vmatpush1.bf16.msra.mxu0 %v693_v54 }
  0x26   : > { %696 = vmatprep.subr.bf16.mxu0 %v695_v55 }
  0x29   : > { %698 = vmatpush1.bf16.msra.mxu0 %v697_v58 }
  0x2a   : > { %432 = vmatprep.subr.mxu0 %v382_v59 }
  0x2d   : > { %433 = vmatpush1.msra.mxu0 %v381_v60 }
  0xe7   : > { %v655_v1 = vpop.f32.mrb[0].mxu0 }
  0xe8   : > { %v291_v2 = vpop.f32.mrb[1].mxu0  ;;  %vm334_vm6 = vcmp.eq.f32.partialorder %v655_v1, %v332_v0 }
  0xe9   : > { %vm333_vm5 = vcmp.eq.f32.partialorder %v291_v2, %v332_v0  ;;  %v615_v7 = vsel %vm334_vm6, 1.0, %v732_v61 }
  0xea   : > { %v614_v3 = vsel %vm333_vm5, 1.0, %v732_v61 }
  0xeb   : > { %v658_v4 = vpop.f32.mrb[2].mxu0  ;;  %622 = vmatmul.mubr.msk.f32.vlgmr.msra.gmra.mrb[8].mxu0 %vm383_vm4, %v614_v3 }
  0xec   : > { %vm336_vm7 = vcmp.eq.f32.partialorder %v658_v4, %v332_v0  ;;  %v301_v5 = vpop.f32.mrb[3].mxu0  ;;  %478 = vmatprep.mubr.f32.mxu0 %v732_v61 }
  0xed   : > { %v617_v6 = vsel %vm336_vm7, 1.0, %v732_v61  ;;  %vm335_vm8 = vcmp.eq.f32.partialorder %v301_v5, %v332_v0 }
  0xee   : > { %625 = vmatmul.mubr.msk.f32.vlgmr.msra.gmra.mrb[0].mxu1 %vm383_vm4, %v617_v6  ;;  %v616_v10 = vsel %vm335_vm8, 1.0, %v732_v61 }
  0xef   : > { %v661_v8 = vpop.f32.mrb[4].mxu0  ;;  %623 = vmatmul.mubr.msk.f32.gmra.mrb[10].mxu0 %vm383_vm4, %v615_v7  ;;  %496 = vmatprep.mubr.f32.mxu1 %v732_v61 }
  0xf0   : > { %v311_v9 = vpop.f32.mrb[5].mxu0  ;;  %484 = vmatprep.mubr.f32.mxu0 %v732_v61  ;;  %vm338_vm10 = vcmp.eq.f32.partialorder %v661_v8, %v332_v0 }
  0xf1   : > { %vm337_vm9 = vcmp.eq.f32.partialorder %v311_v9, %v332_v0  ;;  %v619_v14 = vsel %vm338_vm10, 1.0, %v732_v61 }
  0xf2   : > { %v618_v11 = vsel %vm337_vm9, 1.0, %v732_v61 }
  0xf3   : > { %624 = vmatmul.mubr.msk.f32.gmra.mrb[12].mxu0 %vm383_vm4, %v616_v10  ;;  %626 = vmatmul.mubr.msk.f32.gmra.mrb[2].mxu1 %vm383_vm4, %v618_v11  ;;  %v664_v12 = vpop.f32.mrb[6].mxu0 }
  0xf4   : > { %502 = vmatprep.mubr.f32.mxu1 %v732_v61  ;;  %v321_v13 = vpop.f32.mrb[7].mxu0  ;;  %vm340_vm12 = vcmp.eq.f32.partialorder %v664_v12, %v332_v0 }
  0xf5   : > { %vm339_vm11 = vcmp.eq.f32.partialorder %v321_v13, %v332_v0  ;;  %v621_v16 = vsel %vm340_vm12, 1.0, %v732_v61 }
  0xf6   : > { %v620_v15 = vsel %vm339_vm11, 1.0, %v732_v61 }
  0xf7   : > { %627 = vmatmul.mubr.msk.f32.gmra.mrb[4].mxu1 %vm383_vm4, %v619_v14 }
  0xf8   : > { %508 = vmatprep.mubr.f32.mxu1 %v732_v61 }
  0xfb   : > { %628 = vmatmul.mubr.msk.f32.gmra.mrb[6].mxu1 %vm383_vm4, %v620_v15 }
  0xfc   : > { %514 = vmatprep.mubr.f32.mxu1 %v732_v61 }
  0xff   : > { %629 = vmatmul.mubr.msk.f32.gmra.mrb[8].mxu1 %vm383_vm4, %v621_v16 }
 0x1be   : > { %v474_v17 = vpop.f32.mrb[8].mxu0 }
 0x1bf   : > { %521 = vst [vmem:[%s895_s5] sm:$0xff] %v474_v17  ;;  %v476_v18 = vpop.f32.mrb[9].mxu0 }
 0x1c0   : > { %522 = vst [vmem:[%s895_s5 + $0x8] sm:$0xff] %v476_v18 }
 0x1c1   : > { %v492_v19 = vpop.f32.mrb[0].mxu1 }
 0x1c2   : > { %527 = vst [vmem:[%s895_s5 + $0x30] sm:$0xff] %v492_v19  ;;  %v480_v20 = vpop.f32.mrb[10].mxu0  ;;  %v494_v21 = vpop.f32.mrb[1].mxu1 }
 0x1c3   : > { %523 = vst [vmem:[%s895_s5 + $0x10] sm:$0xff] %v480_v20  ;;  %528 = vst [vmem:[%s895_s5 + $0x38] sm:$0xff] %v494_v21  ;;  %v482_v22 = vpop.f32.mrb[11].mxu0 }
 0x1c4   : > { %524 = vst [vmem:[%s895_s5 + $0x18] sm:$0xff] %v482_v22 }
 0x1c6   : > { %v486_v23 = vpop.f32.mrb[12].mxu0  ;;  %v498_v24 = vpop.f32.mrb[2].mxu1 }
 0x1c7   : > { %525 = vst [vmem:[%s895_s5 + $0x20] sm:$0xff] %v486_v23  ;;  %529 = vst [vmem:[%s895_s5 + $0x40] sm:$0xff] %v498_v24  ;;  %v488_v25 = vpop.f32.mrb[13].mxu0  ;;  %v500_v26 = vpop.f32.mrb[3].mxu1 }
 0x1c8   : > { %526 = vst [vmem:[%s895_s5 + $0x28] sm:$0xff] %v488_v25  ;;  %530 = vst [vmem:[%s895_s5 + $0x48] sm:$0xff] %v500_v26 }
 0x1ca   : > { %v504_v27 = vpop.f32.mrb[4].mxu1 }
 0x1cb   : > { %531 = vst [vmem:[%s895_s5 + $0x50] sm:$0xff] %v504_v27  ;;  %v506_v28 = vpop.f32.mrb[5].mxu1 }
 0x1cc   : > { %532 = vst [vmem:[%s895_s5 + $0x58] sm:$0xff] %v506_v28 }
 0x1ce   : > { %v510_v29 = vpop.f32.mrb[6].mxu1 }
 0x1cf   : > { %533 = vst [vmem:[%s895_s5 + $0x60] sm:$0xff] %v510_v29  ;;  %v512_v30 = vpop.f32.mrb[7].mxu1 }
 0x1d0   : > { %534 = vst [vmem:[%s895_s5 + $0x68] sm:$0xff] %v512_v30 }
 0x1d2   : > { %v516_v31 = vpop.f32.mrb[8].mxu1 }
 0x1d3   : > { %535 = vst [vmem:[%s895_s5 + $0x70] sm:$0xff] %v516_v31  ;;  %v518_v32 = vpop.f32.mrb[9].mxu1 }
 0x1d4   : > { %536 = vst [vmem:[%s895_s5 + $0x78] sm:$0xff] %v518_v32 }
 0x1d5 PF: > { %s13_s12 = sadd.s32 1, %s729_s12  }
 0x1d6   : > { %p10_p4 = scmp.ge.s32.totalorder %s13_s12, 4  }
 0x1d8   :  { %12 = sbr.rel (!%p10_p4) target bundleno = 1 (0x1), region = 62 }

</bundles_post_ra>
